<compile_context>
chip_gen: v7x
topology: tpu7x:2x2x1
jax: 0.10.0
libtpu: 0.0.40
codegen_flags: <defaults>
</compile_context>

<pallas_src>
import jax
import jax.numpy as jnp
from jax.experimental import pallas as pl
from jax.experimental.pallas import tpu as pltpu  # noqa: F401  (TPU backend)


def _conv1x1_sigmoid_kernel(x_ref, w_ref, b_ref, o_ref):
    # x_ref: [M, Cin] f32
    # w_ref: [Cin, Cout_pad] f32  (pre-transposed, lane-dense)
    # b_ref: [1, Cout_pad] f32
    # o_ref: [M, Cout_pad] f32
    y = jax.lax.dot_general(
        x_ref[...], w_ref[...],
        dimension_numbers=(((1,), (0,)), ((), ())),
        preferred_element_type=jnp.float32)            # [M, Cout_pad]
    o_ref[...] = jax.nn.sigmoid(y + b_ref[...]).astype(o_ref.dtype)


def make_conv1x1_sigmoid(weight, bias):
    """Build the fused conv1x1+sigmoid forward.

    weight: [Cout, Cin, 1, 1] f32 (PyTorch layout), bias: [Cout] f32.
    All parameter massaging (transpose to [Cin, Cout], lane padding) happens
    exactly once here, outside the per-call hot path.
    """
    C_out, C_in = weight.shape[0], weight.shape[1]
    C_out_pad = ((C_out + 127) // 128) * 128           # 1824 -> 1920

    # One-time parameter prep (constant-folded / off the hot path).
    w2d = jnp.asarray(weight, jnp.float32).reshape(C_out, C_in).T   # [Cin, Cout]
    b2d = jnp.asarray(bias, jnp.float32).reshape(1, C_out)          # [1, Cout]
    if C_out_pad != C_out:
        w2d = jnp.pad(w2d, ((0, 0), (0, C_out_pad - C_out)))
        b2d = jnp.pad(b2d, ((0, 0), (0, C_out_pad - C_out)))

    def _pallas_matmul(x2d):
        M = x2d.shape[0]
        cost = pl.CostEstimate(
            flops=2 * M * C_in * C_out_pad,
            transcendentals=M * C_out_pad,
            bytes_accessed=(w2d.size * 4 + x2d.size * 4
                            + b2d.size * 4 + M * C_out_pad * 4),
        )
        # Single gridless full-array block on every generation: everything
        # fits VMEM trivially, and any grid would only add per-step overhead
        # to a dispatch-latency-bound op.
        return pl.pallas_call(
            _conv1x1_sigmoid_kernel,
            out_shape=jax.ShapeDtypeStruct((M, C_out_pad), jnp.float32),
            in_specs=[
                pl.BlockSpec((M, C_in), lambda: (0, 0)),
                pl.BlockSpec((C_in, C_out_pad), lambda: (0, 0)),
                pl.BlockSpec((1, C_out_pad), lambda: (0, 0)),
            ],
            out_specs=pl.BlockSpec((M, C_out_pad), lambda: (0, 0)),
            cost_estimate=cost,
        )(x2d, w2d, b2d)

    @jax.jit
    def forward(x_nchw):
        N, cin, H, Wd = x_nchw.shape
        assert cin == C_in
        if H == 1 and Wd == 1:
            x2d = x_nchw.reshape(N, C_in)               # free: H = W = 1
        else:
            x2d = jnp.transpose(x_nchw, (0, 2, 3, 1)).reshape(N * H * Wd, C_in)
        out2d = _pallas_matmul(x2d)[:, :C_out]
        return jnp.transpose(out2d.reshape(N, H, Wd, C_out), (0, 3, 1, 2))

    return forward


if __name__ == "__main__":
    key = jax.random.PRNGKey(0)
    k_x, k_w, k_b = jax.random.split(key, 3)

    C_in, C_out = 76, 1824

    # Deterministic synthetic parameters (shapes from the module __init__).
    # PyTorch Conv2d default init is uniform(-1/sqrt(fan_in), 1/sqrt(fan_in)).
    bound = 1.0 / (C_in ** 0.5)
    weight = jax.random.uniform(k_w, (C_out, C_in, 1, 1),
                                minval=-bound, maxval=bound,
                                dtype=jnp.float32)
    bias = jax.random.uniform(k_b, (C_out,), minval=-bound, maxval=bound,
                              dtype=jnp.float32)

    # Input consistent with the module's forward: [1, 76, 1, 1].
    x = jax.random.normal(k_x, (1, C_in, 1, 1), dtype=jnp.float32)

    forward = make_conv1x1_sigmoid(weight, bias)
    out = forward(x)
    jax.block_until_ready(out)

    # Sanity check against a plain-JAX f32 reference.
    ref = jax.nn.sigmoid(
        jnp.einsum("nchw,oc->nohw", x, weight.reshape(C_out, C_in))
        + bias.reshape(1, C_out, 1, 1)
    )
    assert out.shape == (1, C_out, 1, 1)
    max_err = float(jnp.max(jnp.abs(out - ref)))
    assert jnp.allclose(out, ref, atol=1e-4, rtol=1e-4), max_err

    print("KERNEL_OK")
</pallas_src>

<mosaic_0001>
module attributes {stable_mosaic.version = 11 : i64} {
  func.func @_conv1x1_sigmoid_kernel(%arg0: memref<1x76xf32, #tpu.memory_space<vmem>>, %arg1: memref<76x1920xf32, #tpu.memory_space<vmem>>, %arg2: memref<1x1920xf32, #tpu.memory_space<vmem>>, %arg3: memref<1x1920xf32, #tpu.memory_space<vmem>>) attributes {dimension_semantics = [], scalar_prefetch = 0 : i64, scratch_operands = 0 : i64, tpu.core_type = #tpu.core_type<tc>} {
    %c0 = arith.constant 0 : index
    %c0_0 = arith.constant 0 : index
    %0 = vector.load %arg0[%c0, %c0_0] : memref<1x76xf32, #tpu.memory_space<vmem>>, vector<1x76xf32>
    %c0_1 = arith.constant 0 : index
    %c0_2 = arith.constant 0 : index
    %1 = vector.load %arg1[%c0_1, %c0_2] : memref<76x1920xf32, #tpu.memory_space<vmem>>, vector<76x1920xf32>
    %cst = arith.constant dense<0.000000e+00> : vector<1x1920xf32>
    %2 = tpu.matmul %0, %1, %cst {dimension_numbers = #tpu.dot_dimension_numbers<[1], [0], [0], [1], [0, 0, 1, 1], [], []>} : vector<1x76xf32>, vector<76x1920xf32>, vector<1x1920xf32> -> vector<1x1920xf32>
    %c0_3 = arith.constant 0 : index
    %c0_4 = arith.constant 0 : index
    %3 = vector.load %arg2[%c0_3, %c0_4] : memref<1x1920xf32, #tpu.memory_space<vmem>>, vector<1x1920xf32>
    %4 = arith.addf %2, %3 : vector<1x1920xf32>
    %5 = arith.negf %4 : vector<1x1920xf32>
    %6 = math.exp %5 : vector<1x1920xf32>
    %cst_5 = arith.constant 1.000000e+00 : f32
    %7 = vector.broadcast %cst_5 : f32 to vector<1x1920xf32>
    %8 = arith.addf %7, %6 : vector<1x1920xf32>
    %9 = arith.divf %7, %8 : vector<1x1920xf32>
    %c0_6 = arith.constant 0 : index
    %c0_7 = arith.constant 0 : index
    %10 = vector.load %arg3[%c0_6, %c0_7] : memref<1x1920xf32, #tpu.memory_space<vmem>>, vector<1x1920xf32>
    tpu.vector_store %arg3[%c0_6, %c0_7], %9 {strides = array<i32>} : memref<1x1920xf32, #tpu.memory_space<vmem>>, vector<1x1920xf32>,
    return
  }
}

</mosaic_0001>

<bundles_post_ra>
// kernel: forward.1
= control target key start
LH: loop header
LB: loop body
LE: loop exit
PB: predicated region body
PF: predicated region fallthrough
CT: control target
= control target key end

     0   :  { %8 = vsyncpa [#allocation3], 0  ;;  %s1639_s0 = inlined_call_operand.vmem [shape: f32[1,76], index: 0, kind: input, shape index: {}]   ;;  %s1640_s1 = inlined_call_operand.hbm [shape: f32[76,1920], index: 1, kind: input, shape index: {}]   ;;  %s1641_s2 = inlined_call_operand.hbm [shape: f32[1,1920], index: 2, kind: input, shape index: {}]   ;;  %s1642_s3 = inlined_call_operand.vmem [shape: f32[1,1920], index: 3, kind: output, shape index: {}]  }
   0x1   :  { %9 = vsyncpa [#allocation5], 0  ;;  %s1462_s12 = smov [#allocation2]   ;;  %s1414_s16 = scalar_lea.hbm %s1640_s1, 19200 }
   0x2   :  { %s17_s13 = sshll.u32 %s1462_s12, 4  ;;  %p1415_p0 = scmp.ne.s32.totalorder %s1640_s1, %s1414_s16  ;;  %s18_s13 = int_to_ptr.vmem [resolvable:$true] %s17_s13 }
   0x3   :  { %p1418_p1 = scmp.lt.u32.totalorder %s1414_s16, %s1640_s1 }
   0x5   :  { %p1420_p2 = pnand %p1418_p1, %p1415_p0 }
   0x7   :  { %1423 = shalt.err (!%p1420_p2)
}
   0x8   :  { %s1424_s21 = scalar_lea.vmem %s18_s13, 19200  ;;  %p1429_p4 = scmp.lt.s32.totalorder %s18_s13, %s18_s13 }
   0x9   :  { %p1425_p3 = scmp.ne.s32.totalorder %s18_s13, %s1424_s21  ;;  %p1430_p5 = scmp.lt.s32.totalorder %s1424_s21, %s1424_s21 }
   0xb   :  { %p1431_p6 = por %p1430_p5, %p1429_p4 }
   0xd   :  { %p1432_p7 = pnand %p1431_p6, %p1425_p3 }
   0xf   :  { %1435 = shalt.err (!%p1432_p7)
}
  0x10   :  { %s1463_s22 = smov 1920   ;;  %s1464_s23 = smov 120  }
  0x11   :  { %23 = dma.hbm_to_vmem [thread:$0]  %s1640_s1, 19200, %s18_s13, [#allocation3], %s1463_s22, %s1463_s22, %s1464_s23  }
  0x12   :  { %s1465_s26 = smov [#allocation4]   ;;  %s1436_s30 = scalar_lea.hbm %s1641_s2, 240 }
  0x13   :  { %s30_s27 = sshll.u32 %s1465_s26, 4  ;;  %p1437_p8 = scmp.ne.s32.totalorder %s1641_s2, %s1436_s30  ;;  %s31_s27 = int_to_ptr.vmem [resolvable:$true] %s30_s27 }
  0x14   :  { %p1440_p9 = scmp.lt.u32.totalorder %s1436_s30, %s1641_s2 }
  0x16   :  { %p1442_p10 = pnand %p1440_p9, %p1437_p8 }
  0x18   :  { %1445 = shalt.err (!%p1442_p10)
}
  0x19   :  { %s1446_s8 = scalar_lea.vmem %s31_s27, 240  ;;  %s1450_s1 = scalar_lea.vmem %s31_s27, 256 }
  0x1a   :  { %p1447_p11 = scmp.ne.s32.totalorder %s31_s27, %s1446_s8  ;;  %p1451_p12 = scmp.lt.s32.totalorder %s31_s27, %s31_s27 }
  0x1b   :  { %p1452_p13 = scmp.lt.s32.totalorder %s1450_s1, %s1446_s8 }
  0x1d   :  { %p1453_p0 = por %p1452_p13, %p1451_p12 }
  0x1f   :  { %p1454_p1 = pnand %p1453_p0, %p1447_p11 }
  0x21   :  { %1457 = shalt.err (!%p1454_p1)
}
  0x22   :  { %33 = dma.hbm_to_vmem [thread:$0]  %s1641_s2, 240, %s31_s27, [#allocation5]  }
  0x23   :  { %1458 = dma.done.wait [#allocation3], 19200  }
  0x24   :  { %1459 = vsyncadd [#allocation3], 4294948096 }
  0x25   :  { %1460 = dma.done.wait [#allocation5], 240  }
  0x26   :  { %1461 = vsyncadd [#allocation5], 4294967056  ;;  %v1466_v0 = vmov 0.0   ;;  %v42_v1 = vld [vmem:[#allocation2 + $0x8] sm:$0xff]  ;;  %v57_v2 = vld [vmem:[#allocation2 + $0x80] sm:$0xff]  ;;  %vm274_vm0 = vcmask 1043456  }
  0x27   :  { %384 = vmatprep.mubr.f32.mxu0 %v1466_v0  ;;  %455 = vmatprep.mubr.f32.mxu1 %v1466_v0  ;;  %v44_v3 = vld [vmem:[#allocation2 + $0x18] sm:$0xff]  ;;  %v1175_v4 = vpack.c.bf16 %v57_v2, %v42_v1  ;;  %v59_v5 = vld [vmem:[#allocation2 + $0x90] sm:$0xff]  ;;  %v41_v6 = vld [vmem:[#allocation2] sm:$0xff]  ;;  %vm1467_vm1 = vmmov 1   ;;  %vm270_vm3 = vcmask 621568   ;;  %vm1469_vm4 = vmmov 0  }
  0x28   :  { %v56_v7 = vld [vmem:[#allocation2 + $0x78] sm:$0xff]  ;;  %v1197_v8 = vpack.c.bf16 %v59_v5, %v44_v3  ;;  %v43_v10 = vld [vmem:[#allocation2 + $0x10] sm:$0xff]  ;;  %v58_v11 = vld [vmem:[#allocation2 + $0x88] sm:$0xff] }
  0x29   :  { %v1177_v9 = vpack.c.bf16 %v56_v7, %v41_v6  ;;  %v72_v12 = vld [vmem:[#allocation2 + $0xf8] sm:$0xff]  ;;  %1176 = vmatprep.subr.bf16.mxu0 %v1175_v4  ;;  %v1199_v13 = vpack.c.bf16 %v58_v11, %v43_v10  ;;  %v87_v14 = vld [vmem:[#allocation2 + $0x170] sm:$0xff]  ;;  %v74_v15 = vld [vmem:[#allocation2 + $0x108] sm:$0xff] }
  0x2a   :  { %v89_v16 = vld [vmem:[#allocation2 + $0x180] sm:$0xff]  ;;  %1198 = vmatprep.subr.bf16.mxu1 %v1197_v8  ;;  %v1179_v17 = vpack.c.bf16 %v87_v14, %v72_v12  ;;  %v71_v19 = vld [vmem:[#allocation2 + $0xf0] sm:$0xff]  ;;  %v86_v20 = vld [vmem:[#allocation2 + $0x168] sm:$0xff] }
  0x2b   :  { %1178 = vmatpush1.bf16.msra.mxu0 %v1177_v9  ;;  %v1201_v18 = vpack.c.bf16 %v89_v16, %v74_v15  ;;  %v73_v21 = vld [vmem:[#allocation2 + $0x100] sm:$0xff]  ;;  %1200 = vmatpush1.bf16.msra.mxu1 %v1199_v13  ;;  %v1181_v22 = vpack.c.bf16 %v86_v20, %v71_v19  ;;  %v88_v23 = vld [vmem:[#allocation2 + $0x178] sm:$0xff]  ;;  %v102_v24 = vld [vmem:[#allocation2 + $0x1e8] sm:$0xff] }
  0x2c   :  { %v117_v25 = vld [vmem:[#allocation2 + $0x260] sm:$0xff]  ;;  %1180 = vmatprep.subr.bf16.mxu0 %v1179_v17  ;;  %v1203_v26 = vpack.c.bf16 %v88_v23, %v73_v21  ;;  %v104_v28 = vld [vmem:[#allocation2 + $0x1f8] sm:$0xff]  ;;  %v119_v29 = vld [vmem:[#allocation2 + $0x270] sm:$0xff] }
  0x2d   :  { %1202 = vmatprep.subr.bf16.mxu1 %v1201_v18  ;;  %v1183_v27 = vpack.c.bf16 %v117_v25, %v102_v24  ;;  %v101_v30 = vld [vmem:[#allocation2 + $0x1e0] sm:$0xff]  ;;  %v1205_v31 = vpack.c.bf16 %v119_v29, %v104_v28  ;;  %v116_v32 = vld [vmem:[#allocation2 + $0x258] sm:$0xff]  ;;  %v103_v33 = vld [vmem:[#allocation2 + $0x1f0] sm:$0xff] }
  0x2e   :  { %v118_v34 = vld [vmem:[#allocation2 + $0x268] sm:$0xff]  ;;  %v1185_v35 = vpack.c.bf16 %v116_v32, %v101_v30  ;;  %v132_v36 = vld [vmem:[#allocation2 + $0x2d8] sm:$0xff]  ;;  %v147_v37 = vld [vmem:[#allocation2 + $0x350] sm:$0xff] }
  0x2f   :  { %1182 = vmatpush1.bf16.msra.mxu0 %v1181_v22  ;;  %v134_v38 = vld [vmem:[#allocation2 + $0x2e8] sm:$0xff]  ;;  %1204 = vmatpush1.bf16.msra.mxu1 %v1203_v26  ;;  %v1207_v39 = vpack.c.bf16 %v118_v34, %v103_v33  ;;  %v1187_v40 = vpack.c.bf16 %v147_v37, %v132_v36  ;;  %v149_v41 = vld [vmem:[#allocation2 + $0x360] sm:$0xff]  ;;  %v131_v42 = vld [vmem:[#allocation2 + $0x2d0] sm:$0xff] }
  0x30   :  { %1184 = vmatprep.subr.bf16.mxu0 %v1183_v27  ;;  %v146_v43 = vld [vmem:[#allocation2 + $0x348] sm:$0xff]  ;;  %1206 = vmatprep.subr.bf16.mxu1 %v1205_v31  ;;  %v1209_v44 = vpack.c.bf16 %v149_v41, %v134_v38  ;;  %v133_v45 = vld [vmem:[#allocation2 + $0x2e0] sm:$0xff]  ;;  %v148_v46 = vld [vmem:[#allocation2 + $0x358] sm:$0xff] }
  0x31   :  { %v162_v47 = vld [vmem:[#allocation2 + $0x3c8] sm:$0xff]  ;;  %v177_v48 = vld [vmem:[#allocation2 + $0x440] sm:$0xf]  ;;  %v164_v49 = vld [vmem:[#allocation2 + $0x3d8] sm:$0xff]  ;;  %v1189_v51 = vpack.c.bf16 %v146_v43, %v131_v42  ;;  %v1211_v53 = vpack.c.bf16 %v148_v46, %v133_v45 }
  0x32   :  { %v179_v50 = vld [vmem:[#allocation2 + $0x450] sm:$0xf]  ;;  %vm1517_vm2 = vmpackc.low %vm274_vm0, %vm1467_vm1  ;;  %v1191_v54 = vpack.c.bf16 %v177_v48, %v162_v47  ;;  %v161_v55 = vld [vmem:[#allocation2 + $0x3c0] sm:$0xff] }
  0x33   :  { %1186 = vmatpush1.bf16.msra.mxu0 %v1185_v35  ;;  %1208 = vmatpush1.bf16.msra.mxu1 %v1207_v39  ;;  %v176_v56 = vld [vmem:[#allocation2 + $0x438] sm:$0xf]  ;;  %v163_v57 = vld [vmem:[#allocation2 + $0x3d0] sm:$0xff]  ;;  %v1213_v58 = vpack.c.bf16 %v179_v50, %v164_v49  ;;  %v178_v59 = vld [vmem:[#allocation2 + $0x448] sm:$0xf] }
  0x34   :  { %1188 = vmatprep.subr.bf16.mxu0 %v1187_v40  ;;  %1210 = vmatprep.subr.bf16.mxu1 %v1209_v44  ;;  %v46_v60 = vld [vmem:[#allocation2 + $0x28] sm:$0xff]  ;;  %v61_v61 = vld [vmem:[#allocation2 + $0xa0] sm:$0xff]  ;;  %v48_v62 = vld [vmem:[#allocation2 + $0x38] sm:$0xff]  ;;  %v1194_v1 = vpack.c.bf16 %v176_v56, %v161_v55  ;;  %v1216_v2 = vpack.c.bf16 %v178_v59, %v163_v57 }
  0x35   :  { %v63_v63 = vld [vmem:[#allocation2 + $0xb0] sm:$0xff]  ;;  %v1219_v3 = vpack.c.bf16 %v61_v61, %v46_v60  ;;  %v45_v4 = vld [vmem:[#allocation2 + $0x20] sm:$0xff]  ;;  %v60_v5 = vld [vmem:[#allocation2 + $0x98] sm:$0xff] }
  0x36   :  { %v47_v6 = vld [vmem:[#allocation2 + $0x30] sm:$0xff]  ;;  %v1241_v7 = vpack.c.bf16 %v63_v63, %v48_v62  ;;  %v62_v8 = vld [vmem:[#allocation2 + $0xa8] sm:$0xff]  ;;  %v76_v9 = vld [vmem:[#allocation2 + $0x118] sm:$0xff]  ;;  %v1221_v14 = vpack.c.bf16 %v60_v5, %v45_v4 }
  0x37   :  { %1190 = vmatpush1.bf16.msra.mxu0 %v1189_v51  ;;  %1212 = vmatpush1.bf16.msra.mxu1 %v1211_v53  ;;  %v91_v10 = vld [vmem:[#allocation2 + $0x190] sm:$0xff]  ;;  %v78_v11 = vld [vmem:[#allocation2 + $0x128] sm:$0xff]  ;;  %v93_v12 = vld [vmem:[#allocation2 + $0x1a0] sm:$0xff]  ;;  %v1243_v15 = vpack.c.bf16 %v62_v8, %v47_v6 }
  0x38   :  { %1193 = vmatprep.subr.msk.bf16.mxu0 %vm1517_vm2, %v1191_v54  ;;  %1215 = vmatprep.subr.msk.bf16.mxu1 %vm1517_vm2, %v1213_v58  ;;  %v1530_v13 = vld [vmem:[%s1639_s0] sm:$0x1]  ;;  %v1223_v16 = vpack.c.bf16 %v91_v10, %v76_v9  ;;  %v75_v17 = vld [vmem:[#allocation2 + $0x110] sm:$0xff]  ;;  %v90_v18 = vld [vmem:[#allocation2 + $0x188] sm:$0xff]  ;;  %v1245_v20 = vpack.c.bf16 %v93_v12, %v78_v11 }
  0x39   :  { %v77_v19 = vld [vmem:[#allocation2 + $0x120] sm:$0xff]  ;;  %v92_v21 = vld [vmem:[#allocation2 + $0x198] sm:$0xff]  ;;  %v106_v22 = vld [vmem:[#allocation2 + $0x208] sm:$0xff]  ;;  %v1225_v26 = vpack.c.bf16 %v90_v18, %v75_v17 }
  0x3a   :  { %v121_v23 = vld [vmem:[#allocation2 + $0x280] sm:$0xff]  ;;  %v108_v24 = vld [vmem:[#allocation2 + $0x218] sm:$0xff]  ;;  %v123_v25 = vld [vmem:[#allocation2 + $0x290] sm:$0xff]  ;;  %v1247_v27 = vpack.c.bf16 %v92_v21, %v77_v19 }
  0x3b   :  { %1196 = vmatpush1.bf16.msk.msra.mxu0 %vm1517_vm2, %v1194_v1  ;;  %1218 = vmatpush1.bf16.msk.msra.mxu1 %vm1517_vm2, %v1216_v2  ;;  %v1227_v28 = vpack.c.bf16 %v121_v23, %v106_v22  ;;  %v105_v29 = vld [vmem:[#allocation2 + $0x200] sm:$0xff]  ;;  %v120_v30 = vld [vmem:[#allocation2 + $0x278] sm:$0xff]  ;;  %v107_v31 = vld [vmem:[#allocation2 + $0x210] sm:$0xff]  ;;  %v1249_v32 = vpack.c.bf16 %v123_v25, %v108_v24 }
  0x3c   :  { %1220 = vmatprep.subr.bf16.mxu0 %v1219_v3  ;;  %1242 = vmatprep.subr.bf16.mxu1 %v1241_v7  ;;  %v122_v33 = vld [vmem:[#allocation2 + $0x288] sm:$0xff]  ;;  %v136_v34 = vld [vmem:[#allocation2 + $0x2f8] sm:$0xff]  ;;  %v151_v35 = vld [vmem:[#allocation2 + $0x370] sm:$0xff]  ;;  %v1229_v38 = vpack.c.bf16 %v120_v30, %v105_v29 }
  0x3d   :  { %v138_v36 = vld [vmem:[#allocation2 + $0x308] sm:$0xff]  ;;  %v153_v37 = vld [vmem:[#allocation2 + $0x380] sm:$0xff]  ;;  %v1251_v39 = vpack.c.bf16 %v122_v33, %v107_v31  ;;  %v1231_v40 = vpack.c.bf16 %v151_v35, %v136_v34  ;;  %v135_v41 = vld [vmem:[#allocation2 + $0x2f0] sm:$0xff] }
  0x3e   :  { %1105 = vmatmul.mubr.msk.f32.vlgmr.msra.gmra.mrb[0].mxu0 %vm270_vm3, %v1530_v13  ;;  %1108 = vmatmul.mubr.msk.f32.vlgmr.msra.gmra.mrb[0].mxu1 %vm270_vm3, %v1530_v13  ;;  %v150_v42 = vld [vmem:[#allocation2 + $0x368] sm:$0xff]  ;;  %v137_v43 = vld [vmem:[#allocation2 + $0x300] sm:$0xff]  ;;  %v1253_v44 = vpack.c.bf16 %v153_v37, %v138_v36  ;;  %v152_v45 = vld [vmem:[#allocation2 + $0x378] sm:$0xff] }
  0x3f   :  { %1222 = vmatpush1.bf16.msra.mxu0 %v1221_v14  ;;  %1244 = vmatpush1.bf16.msra.mxu1 %v1243_v15  ;;  %v166_v46 = vld [vmem:[#allocation2 + $0x3e8] sm:$0xff]  ;;  %v181_v47 = vld [vmem:[#allocation2 + $0x460] sm:$0xf]  ;;  %v168_v48 = vld [vmem:[#allocation2 + $0x3f8] sm:$0xff]  ;;  %v1233_v50 = vpack.c.bf16 %v150_v42, %v135_v41  ;;  %v1255_v51 = vpack.c.bf16 %v152_v45, %v137_v43 }
  0x40   :  { %1224 = vmatprep.subr.bf16.mxu0 %v1223_v16  ;;  %1246 = vmatprep.subr.bf16.mxu1 %v1245_v20  ;;  %v183_v49 = vld [vmem:[#allocation2 + $0x470] sm:$0xf]  ;;  %v1235_v53 = vpack.c.bf16 %v181_v47, %v166_v46  ;;  %v165_v54 = vld [vmem:[#allocation2 + $0x3e0] sm:$0xff]  ;;  %v180_v55 = vld [vmem:[#allocation2 + $0x458] sm:$0xf] }
  0x41   :  { %526 = vmatprep.mubr.f32.mxu0 %v1466_v0  ;;  %597 = vmatprep.mubr.f32.mxu1 %v1466_v0  ;;  %v167_v56 = vld [vmem:[#allocation2 + $0x3f0] sm:$0xff]  ;;  %v1257_v57 = vpack.c.bf16 %v183_v49, %v168_v48  ;;  %v182_v58 = vld [vmem:[#allocation2 + $0x468] sm:$0xf]  ;;  %v65_v60 = vld [vmem:[#allocation2 + $0xc0] sm:$0xff]  ;;  %v1238_v63 = vpack.c.bf16 %v180_v55, %v165_v54 }
  0x42   :  { %v50_v59 = vld [vmem:[#allocation2 + $0x48] sm:$0xff]  ;;  %v52_v61 = vld [vmem:[#allocation2 + $0x58] sm:$0xff]  ;;  %v67_v62 = vld [vmem:[#allocation2 + $0xd0] sm:$0xff]  ;;  %v1260_v1 = vpack.c.bf16 %v182_v58, %v167_v56 }
  0x43   :  { %1226 = vmatpush1.bf16.msra.mxu0 %v1225_v26  ;;  %1248 = vmatpush1.bf16.msra.mxu1 %v1247_v27  ;;  %v1263_v2 = vpack.c.bf16 %v65_v60, %v50_v59  ;;  %v49_v3 = vld [vmem:[#allocation2 + $0x40] sm:$0xff]  ;;  %v64_v4 = vld [vmem:[#allocation2 + $0xb8] sm:$0xff]  ;;  %v51_v5 = vld [vmem:[#allocation2 + $0x50] sm:$0xff]  ;;  %v1285_v6 = vpack.c.bf16 %v67_v62, %v52_v61 }
  0x44   :  { %1228 = vmatprep.subr.bf16.mxu0 %v1227_v28  ;;  %1250 = vmatprep.subr.bf16.mxu1 %v1249_v32  ;;  %v66_v7 = vld [vmem:[#allocation2 + $0xc8] sm:$0xff]  ;;  %v80_v8 = vld [vmem:[#allocation2 + $0x138] sm:$0xff]  ;;  %v95_v9 = vld [vmem:[#allocation2 + $0x1b0] sm:$0xff]  ;;  %v1265_v12 = vpack.c.bf16 %v64_v4, %v49_v3 }
  0x45   :  { %v82_v10 = vld [vmem:[#allocation2 + $0x148] sm:$0xff]  ;;  %v97_v11 = vld [vmem:[#allocation2 + $0x1c0] sm:$0xff]  ;;  %v1287_v14 = vpack.c.bf16 %v66_v7, %v51_v5  ;;  %v1267_v15 = vpack.c.bf16 %v95_v9, %v80_v8  ;;  %v79_v16 = vld [vmem:[#allocation2 + $0x130] sm:$0xff] }
  0x46   :  { %v94_v17 = vld [vmem:[#allocation2 + $0x1a8] sm:$0xff]  ;;  %v81_v18 = vld [vmem:[#allocation2 + $0x140] sm:$0xff]  ;;  %v1289_v19 = vpack.c.bf16 %v97_v11, %v82_v10  ;;  %v96_v20 = vld [vmem:[#allocation2 + $0x1b8] sm:$0xff] }
  0x47   :  { %1230 = vmatpush1.bf16.msra.mxu0 %v1229_v38  ;;  %1252 = vmatpush1.bf16.msra.mxu1 %v1251_v39  ;;  %v110_v21 = vld [vmem:[#allocation2 + $0x228] sm:$0xff]  ;;  %v125_v22 = vld [vmem:[#allocation2 + $0x2a0] sm:$0xff]  ;;  %v112_v23 = vld [vmem:[#allocation2 + $0x238] sm:$0xff]  ;;  %v1269_v25 = vpack.c.bf16 %v94_v17, %v79_v16  ;;  %v1291_v26 = vpack.c.bf16 %v96_v20, %v81_v18 }
  0x48   :  { %1232 = vmatprep.subr.bf16.mxu0 %v1231_v40  ;;  %1254 = vmatprep.subr.bf16.mxu1 %v1253_v44  ;;  %v127_v24 = vld [vmem:[#allocation2 + $0x2b0] sm:$0xff]  ;;  %v1271_v27 = vpack.c.bf16 %v125_v22, %v110_v21  ;;  %v109_v28 = vld [vmem:[#allocation2 + $0x220] sm:$0xff]  ;;  %v124_v29 = vld [vmem:[#allocation2 + $0x298] sm:$0xff] }
  0x49   :  { %v111_v30 = vld [vmem:[#allocation2 + $0x230] sm:$0xff]  ;;  %v1293_v31 = vpack.c.bf16 %v127_v24, %v112_v23  ;;  %v126_v32 = vld [vmem:[#allocation2 + $0x2a8] sm:$0xff]  ;;  %v140_v33 = vld [vmem:[#allocation2 + $0x318] sm:$0xff]  ;;  %v1273_v37 = vpack.c.bf16 %v124_v29, %v109_v28 }
  0x4a   :  { %v155_v34 = vld [vmem:[#allocation2 + $0x390] sm:$0xff]  ;;  %v142_v35 = vld [vmem:[#allocation2 + $0x328] sm:$0xff]  ;;  %v157_v36 = vld [vmem:[#allocation2 + $0x3a0] sm:$0xff]  ;;  %v1295_v38 = vpack.c.bf16 %v126_v32, %v111_v30 }
  0x4b   :  { %1234 = vmatpush1.bf16.msra.mxu0 %v1233_v50  ;;  %1256 = vmatpush1.bf16.msra.mxu1 %v1255_v51  ;;  %v1275_v39 = vpack.c.bf16 %v155_v34, %v140_v33  ;;  %v139_v40 = vld [vmem:[#allocation2 + $0x310] sm:$0xff]  ;;  %v154_v41 = vld [vmem:[#allocation2 + $0x388] sm:$0xff]  ;;  %v141_v42 = vld [vmem:[#allocation2 + $0x320] sm:$0xff]  ;;  %v1297_v43 = vpack.c.bf16 %v157_v36, %v142_v35 }
  0x4c   :  { %1237 = vmatprep.subr.msk.bf16.mxu0 %vm1517_vm2, %v1235_v53  ;;  %1259 = vmatprep.subr.msk.bf16.mxu1 %vm1517_vm2, %v1257_v57  ;;  %v156_v44 = vld [vmem:[#allocation2 + $0x398] sm:$0xff]  ;;  %v170_v45 = vld [vmem:[#allocation2 + $0x408] sm:$0xff]  ;;  %v185_v46 = vld [vmem:[#allocation2 + $0x480] sm:$0xf]  ;;  %v1277_v49 = vpack.c.bf16 %v154_v41, %v139_v40 }
  0x4d   :  { %v172_v47 = vld [vmem:[#allocation2 + $0x418] sm:$0xff]  ;;  %v187_v48 = vld [vmem:[#allocation2 + $0x490] sm:$0xf]  ;;  %v1299_v50 = vpack.c.bf16 %v156_v44, %v141_v42  ;;  %v1279_v51 = vpack.c.bf16 %v185_v46, %v170_v45  ;;  %v169_v53 = vld [vmem:[#allocation2 + $0x400] sm:$0xff] }
  0x4e   :  { %v184_v54 = vld [vmem:[#allocation2 + $0x478] sm:$0xf]  ;;  %v171_v55 = vld [vmem:[#allocation2 + $0x410] sm:$0xff]  ;;  %v1301_v56 = vpack.c.bf16 %v187_v48, %v172_v47  ;;  %v186_v57 = vld [vmem:[#allocation2 + $0x488] sm:$0xf] }
  0x4f   :  { %1240 = vmatpush1.bf16.msk.msra.mxu0 %vm1517_vm2, %v1238_v63  ;;  %1262 = vmatpush1.bf16.msk.msra.mxu1 %vm1517_vm2, %v1260_v1  ;;  %v54_v58 = vld [vmem:[#allocation2 + $0x68] sm:$0xff]  ;;  %v69_v59 = vld [vmem:[#allocation2 + $0xe0] sm:$0xff]  ;;  %v1282_v60 = vpack.c.bf16 %v184_v54, %v169_v53  ;;  %v1304_v61 = vpack.c.bf16 %v186_v57, %v171_v55  ;;  %v68_v1 = vld [vmem:[#allocation2 + $0xd8] sm:$0xff] }
  0x50   :  { %1264 = vmatprep.subr.bf16.mxu0 %v1263_v2  ;;  %1286 = vmatprep.subr.bf16.mxu1 %v1285_v6  ;;  %v1307_v62 = vpack.c.bf16 %v69_v59, %v54_v58  ;;  %v53_v63 = vld [vmem:[#allocation2 + $0x60] sm:$0xff]  ;;  %v55_v2 = vld [vmem:[#allocation2 + $0x70] sm:$0xff]  ;;  %v70_v3 = vld [vmem:[#allocation2 + $0xe8] sm:$0xff] }
  0x51   :  { %v84_v4 = vld [vmem:[#allocation2 + $0x158] sm:$0xff]  ;;  %v99_v5 = vld [vmem:[#allocation2 + $0x1d0] sm:$0xff]  ;;  %v1309_v6 = vpack.c.bf16 %v68_v1, %v53_v63  ;;  %v1330_v7 = vpack.c.bf16 %v70_v3, %v55_v2  ;;  %v98_v10 = vld [vmem:[#allocation2 + $0x1c8] sm:$0xff] }
  0x52   :  { %1111 = vmatmul.mubr.msk.f32.vlgmr.msra.gmra.mrb[2].mxu0 %vm270_vm3, %v1530_v13  ;;  %1114 = vmatmul.mubr.msk.f32.vlgmr.msra.gmra.mrb[2].mxu1 %vm270_vm3, %v1530_v13  ;;  %v1311_v8 = vpack.c.bf16 %v99_v5, %v84_v4  ;;  %v83_v9 = vld [vmem:[#allocation2 + $0x150] sm:$0xff]  ;;  %v85_v11 = vld [vmem:[#allocation2 + $0x160] sm:$0xff]  ;;  %v128_v21 = vld [vmem:[#allocation2 + $0x2b8] sm:$0xff] }
  0x53   :  { %1266 = vmatpush1.bf16.msra.mxu0 %v1265_v12  ;;  %1288 = vmatpush1.bf16.msra.mxu1 %v1287_v14  ;;  %v1468_v12 = vmov 0.0|0.0   ;;  %v100_v14 = vld [vmem:[#allocation2 + $0x1d8] sm:$0xff]  ;;  %v129_v16 = vld [vmem:[#allocation2 + $0x2c0] sm:$0xff]  ;;  %v1313_v17 = vpack.c.bf16 %v98_v10, %v83_v9  ;;  %v115_v22 = vld [vmem:[#allocation2 + $0x250] sm:$0xff] }
  0x54   :  { %1268 = vmatprep.subr.bf16.mxu0 %v1267_v15  ;;  %1290 = vmatprep.subr.bf16.mxu1 %v1289_v19  ;;  %v114_v15 = vld [vmem:[#allocation2 + $0x248] sm:$0xff]  ;;  %v1333_v18 = vpack.c.bf16 %v100_v14, %v85_v11  ;;  %v113_v20 = vld [vmem:[#allocation2 + $0x240] sm:$0xff]  ;;  %v144_v24 = vld [vmem:[#allocation2 + $0x338] sm:$0xff] }
  0x55   :  { %668 = vmatprep.mubr.f32.mxu0 %v1466_v0  ;;  %739 = vmatprep.mubr.f32.mxu1 %v1466_v0  ;;  %v1315_v19 = vpack.c.bf16 %v129_v16, %v114_v15  ;;  %v130_v23 = vld [vmem:[#allocation2 + $0x2c8] sm:$0xff]  ;;  %v143_v29 = vld [vmem:[#allocation2 + $0x330] sm:$0xff]  ;;  %v160_v32 = vld [vmem:[#allocation2 + $0x3b8] sm:$0xff] }
  0x56   :  { %v158_v30 = vld [vmem:[#allocation2 + $0x3a8] sm:$0xff]  ;;  %v189_v34 = vld [vmem:[#allocation2 + $0x4a0] sm:$0xf]  ;;  %v191_v46 = vld [vmem:[#allocation4] sm:$0xff] }
  0x57   :  { %1270 = vmatpush1.bf16.msra.mxu0 %v1269_v25  ;;  %1292 = vmatpush1.bf16.msra.mxu1 %v1291_v26  ;;  %v159_v25 = vld [vmem:[#allocation2 + $0x3b0] sm:$0xff]  ;;  %v1317_v26 = vpack.c.bf16 %v128_v21, %v113_v20  ;;  %v174_v33 = vld [vmem:[#allocation2 + $0x428] sm:$0xff]  ;;  %v1321_v35 = vpack.c.bf16 %v158_v30, %v143_v29  ;;  %v1470_v20 = vmov 1966171168  }
  0x58   :  { %1272 = vmatprep.subr.bf16.mxu0 %v1271_v27  ;;  %1294 = vmatprep.subr.bf16.mxu1 %v1293_v31  ;;  %v1336_v27 = vpack.c.bf16 %v130_v23, %v115_v22  ;;  %v1319_v28 = vpack.c.bf16 %v159_v25, %v144_v24  ;;  %v145_v31 = vld [vmem:[#allocation2 + $0x340] sm:$0xff]  ;;  %v190_v40 = vld [vmem:[#allocation2 + $0x4a8] sm:$0xf]  ;;  %v997_v21 = vunpack.c.l.s4 %v1470_v20 }
  0x59   :  { %v1339_v36 = vpack.c.bf16 %v160_v32, %v145_v31 }
  0x5a   :  { %v998_v32 = vunpack.c.0.s8 %v997_v21 }
  0x5b   :  { %1274 = vmatpush1.bf16.msra.mxu0 %v1273_v37  ;;  %1296 = vmatpush1.bf16.msra.mxu1 %v1295_v38  ;;  %v1323_v37 = vpack.c.bf16 %v189_v34, %v174_v33  ;;  %v188_v38 = vld [vmem:[#allocation2 + $0x498] sm:$0xf] }
  0x5c   :  { %1276 = vmatprep.subr.bf16.mxu0 %v1275_v39  ;;  %1298 = vmatprep.subr.bf16.mxu1 %v1297_v43  ;;  %v175_v39 = vld [vmem:[#allocation2 + $0x430] sm:$0xff]  ;;  %v195_v43 = vlaneseq }
  0x5d   :  { %v1342_v42 = vpack.c.bf16 %v190_v40, %v175_v39 }
  0x5e   :  { %v1579_v44 = vshrl.u32 %v195_v43, 7  ;;  %vm1094_vm5 = vcmp.lt.s32.totalorder %v195_v43, 896 }
  0x5f   :  { %1278 = vmatpush1.bf16.msra.mxu0 %v1277_v49  ;;  %1300 = vmatpush1.bf16.msra.mxu1 %v1299_v50 }
  0x60   :  { %1281 = vmatprep.subr.msk.bf16.mxu0 %vm1517_vm2, %v1279_v51  ;;  %1303 = vmatprep.subr.msk.bf16.mxu1 %vm1517_vm2, %v1301_v56  ;;  %v197_v45 = vsub.s32 0, %v1579_v44  ;;  %v205_v47 = vsub.s32 2, %v1579_v44  ;;  %v201_v48 = vsub.s32 1, %v1579_v44  ;;  %v209_v52 = vsub.s32 3, %v1579_v44 }
  0x61   :  { %v213_v2 = vsub.s32 4, %v1579_v44  ;;  %v221_v3 = vsub.s32 6, %v1579_v44  ;;  %v217_v4 = vsub.s32 5, %v1579_v44 }
  0x62   :  { %v198_v49 = vrot.slane %v191_v46, %v197_v45  ;;  %v206_v50 = vrot.slane %v191_v46, %v205_v47  ;;  %v210_v51 = vrot.slane %v191_v46, %v209_v52 }
  0x63   :  { %1284 = vmatpush1.bf16.msk.msra.mxu0 %vm1517_vm2, %v1282_v60  ;;  %1306 = vmatpush1.bf16.msk.msra.mxu1 %vm1517_vm2, %v1304_v61  ;;  %v214_v11 = vrot.slane %v191_v46, %v213_v2  ;;  %v222_v15 = vrot.slane %v191_v46, %v221_v3  ;;  %v218_v16 = vrot.slane %v191_v46, %v217_v4 }
  0x64   :  { %1308 = vmatprep.subr.bf16.mxu0 %v1307_v62  ;;  %1329 = vmatprep.subr.bf16.mxu1 %v1468_v12 }
  0x66   :  { %1117 = vmatmul.mubr.msk.f32.vlgmr.msra.gmra.mrb[4].mxu0 %vm270_vm3, %v1530_v13  ;;  %1120 = vmatmul.mubr.msk.f32.vlgmr.msra.gmra.mrb[4].mxu1 %vm270_vm3, %v1530_v13 }
  0x67   :  { %1310 = vmatpush1.bf16.msra.mxu0 %v1309_v6  ;;  %1331 = vmatpush3.bf16.msra.mxu1 %v1330_v7  ;;  %v225_v6 = vsub.s32 7, %v1579_v44 }
  0x68   :  { %1312 = vmatprep.subr.bf16.mxu0 %v1311_v8  ;;  %1332 = vmatprep.subr.bf16.mxu1 %v1468_v12 }
  0x69   :  { %810 = vmatprep.mubr.f32.mxu0 %v1466_v0  ;;  %1172 = vmatprep.mubr.msk.f32.mxu1 %vm1469_vm4, %v1466_v0  ;;  %v173_v0 = vld [vmem:[#allocation2 + $0x420] sm:$0xff] }
  0x6a   :  { %v1326_v41 = vpack.c.bf16 %v188_v38, %v173_v0 }
  0x6b   :  { %1314 = vmatpush1.bf16.msra.mxu0 %v1313_v17  ;;  %1334 = vmatpush3.bf16.msra.mxu1 %v1333_v18  ;;  %v226_v18 = vrot.slane %v191_v46, %v225_v6 }
  0x6c   :  { %1316 = vmatprep.subr.bf16.mxu0 %v1315_v19  ;;  %1335 = vmatprep.subr.bf16.mxu1 %v1468_v12 }
  0x6f   :  { %1318 = vmatpush1.bf16.msra.mxu0 %v1317_v26  ;;  %1337 = vmatpush3.bf16.msra.mxu1 %v1336_v27 }
  0x70   :  { %1320 = vmatprep.subr.bf16.mxu0 %v1319_v28  ;;  %1338 = vmatprep.subr.bf16.mxu1 %v1468_v12 }
  0x73   :  { %1322 = vmatpush1.bf16.msra.mxu0 %v1321_v35  ;;  %1340 = vmatpush3.bf16.msra.mxu1 %v1339_v36  ;;  %v1604_v36 = vsub.s32 %v998_v32, %v1579_v44 }
  0x74   :  { %1325 = vmatprep.subr.msk.bf16.mxu0 %vm1517_vm2, %v1323_v37  ;;  %1341 = vmatprep.subr.bf16.mxu1 %v1468_v12 }
  0x77   :  { %1328 = vmatpush1.bf16.msk.msra.mxu0 %vm1517_vm2, %v1326_v41  ;;  %1344 = vmatpush3.bf16.msk.msra.mxu1 %vm1517_vm2, %v1342_v42  ;;  %v192_v42 = vld [vmem:[#allocation4 + $0x8] sm:$0xff] }
  0x7a   :  { %1123 = vmatmul.mubr.msk.f32.vlgmr.msra.gmra.mrb[6].mxu0 %vm270_vm3, %v1530_v13  ;;  %1173 = vmatmul.mubr.msk.f32.vlgmr.msra.gmra.mrb[6].mxu1 %vm270_vm3, %v1530_v13  ;;  %v202_v13 = vrot.slane %v191_v46, %v201_v48 }
 0x111   :  { %v386_v53 = vpop.f32.mrb[0].mxu0  ;;  %v457_v55 = vpop.f32.mrb[0].mxu1 }
 0x112   :  { %v387_v54 = vadd.f32 %v386_v53, %v198_v49  ;;  %v388_v56 = vpop.f32.mrb[1].mxu0  ;;  %v458_v57 = vadd.f32 %v457_v55, %v206_v50  ;;  %v459_v59 = vpop.f32.mrb[1].mxu1 }
 0x113   :  { %v389_v58 = vadd.f32 %v388_v56, %v202_v13  ;;  %v460_v61 = vadd.f32 %v459_v59, %v210_v51 }
 0x114   :  { %v1126_v60 = vmul.f32 -1.442695, %v387_v54  ;;  %v1128_v62 = vmul.f32 -1.442695, %v458_v57  ;;  %v230_v54 = vrot.slane %v192_v42, %v197_v45  ;;  %v238_v57 = vrot.slane %v192_v42, %v205_v47 }
 0x115   :  { %v1127_v63 = vmul.f32 -1.442695, %v389_v58  ;;  %v1129_v1 = vmul.f32 -1.442695, %v460_v61  ;;  %v234_v58 = vrot.slane %v192_v42, %v201_v48 }
 0x116   :  { %1354 = vpow2.f32 %v1126_v60  ;;  %v242_v60 = vrot.slane %v192_v42, %v209_v52 }
 0x117   :  { %1356 = vpow2.f32 %v1128_v62 }
 0x118   :  { %1358 = vpow2.f32 %v1127_v63 }
 0x119   :  { %1360 = vpow2.f32 %v1129_v1 }
 0x120   :  { %v1355_v5 = vpop.eup %1354 }
 0x121   :  { %v1357_v7 = vpop.eup %1356  ;;  %v932_v8 = vadd.f32 1.0, %v1355_v5 }
 0x122   :  { %v1359_v9 = vpop.eup %1358  ;;  %v934_v10 = vadd.f32 1.0, %v1357_v7 }
 0x123   :  { %v1361_v12 = vpop.eup %1360  ;;  %1362 = vrcp.f32 %v932_v8  ;;  %v933_v14 = vadd.f32 1.0, %v1359_v9 }
 0x124   :  { %1364 = vrcp.f32 %v934_v10  ;;  %v935_v17 = vadd.f32 1.0, %v1361_v12 }
 0x125   :  { %1366 = vrcp.f32 %v933_v14  ;;  %v528_v19 = vpop.f32.mrb[2].mxu0  ;;  %v599_v23 = vpop.f32.mrb[2].mxu1 }
 0x126   :  { %1368 = vrcp.f32 %v935_v17  ;;  %v529_v22 = vadd.f32 %v528_v19, %v214_v11  ;;  %v530_v24 = vpop.f32.mrb[3].mxu0  ;;  %v600_v25 = vadd.f32 %v599_v23, %v222_v15  ;;  %v601_v27 = vpop.f32.mrb[3].mxu1 }
 0x127   :  { %v531_v26 = vadd.f32 %v530_v24, %v218_v16  ;;  %v602_v29 = vadd.f32 %v601_v27, %v226_v18  ;;  %v246_v24 = vrot.slane %v192_v42, %v213_v2 }
 0x128   :  { %v1130_v28 = vmul.f32 -1.442695, %v529_v22  ;;  %v1132_v30 = vmul.f32 -1.442695, %v600_v25  ;;  %v250_v25 = vrot.slane %v192_v42, %v217_v4 }
 0x129   :  { %v1131_v31 = vmul.f32 -1.442695, %v531_v26  ;;  %v1133_v33 = vmul.f32 -1.442695, %v602_v29  ;;  %v254_v26 = vrot.slane %v192_v42, %v221_v3 }
 0x12a   :  { %1370 = vpow2.f32 %v1130_v28 }
 0x12b   :  { %1372 = vpow2.f32 %v1132_v30 }
 0x12c   :  { %1374 = vpow2.f32 %v1131_v31 }
 0x12d   :  { %v1363_v34 = vpop.eup %1362  ;;  %1376 = vpow2.f32 %v1133_v33 }
 0x12e   :  { %v1365_v35 = vpop.eup %1364 }
 0x12f   :  { %v1367_v37 = vpop.eup %1366 }
 0x130   :  { %v1369_v0 = vpop.eup %1368  ;;  %v992_v38 = vcombine.low %v1363_v34, %v1367_v37 }
 0x131   :  { %v993_v39 = vcombine.low %v1365_v35, %v1369_v0 }
 0x132   :  { %v1002_v40 = vrot.slane %v992_v38, %v1604_v36 }
 0x133   :  { %v1009_v41 = vrot.slane %v993_v39, %v1604_v36 }
 0x134   :  { %v1371_v46 = vpop.eup %1370 }
 0x135   :  { %v1373_v49 = vpop.eup %1372  ;;  %v1024_v50 = vcombine.low %v1002_v40, %v1009_v41  ;;  %v936_v13 = vadd.f32 1.0, %v1371_v46 }
 0x136   :  { %v1375_v51 = vpop.eup %1374  ;;  %v938_v53 = vadd.f32 1.0, %v1373_v49 }
 0x137   :  { %v1377_v55 = vpop.eup %1376  ;;  %1378 = vrcp.f32 %v936_v13  ;;  %v937_v56 = vadd.f32 1.0, %v1375_v51  ;;  %v1032_v28 = vrot.slane %v1024_v50, %v1604_v36 }
 0x138   :  { %1380 = vrcp.f32 %v938_v53  ;;  %v939_v59 = vadd.f32 1.0, %v1377_v55 }
 0x139   :  { %1382 = vrcp.f32 %v937_v56  ;;  %v670_v61 = vpop.f32.mrb[4].mxu0  ;;  %v741_v63 = vpop.f32.mrb[4].mxu1 }
 0x13a   :  { %1384 = vrcp.f32 %v939_v59  ;;  %v671_v62 = vadd.f32 %v670_v61, %v230_v54  ;;  %v672_v45 = vpop.f32.mrb[5].mxu0  ;;  %v742_v1 = vadd.f32 %v741_v63, %v238_v57  ;;  %v743_v6 = vpop.f32.mrb[5].mxu1 }
 0x13b   :  { %v673_v5 = vadd.f32 %v672_v45, %v234_v58  ;;  %v744_v8 = vadd.f32 %v743_v6, %v242_v60 }
 0x13c   :  { %v1134_v7 = vmul.f32 -1.442695, %v671_v62  ;;  %v1136_v47 = vmul.f32 -1.442695, %v742_v1 }
 0x13d   :  { %v1135_v9 = vmul.f32 -1.442695, %v673_v5  ;;  %v1137_v48 = vmul.f32 -1.442695, %v744_v8 }
 0x13e   :  { %1386 = vpow2.f32 %v1134_v7 }
 0x13f   :  { %1388 = vpow2.f32 %v1136_v47 }
 0x140   :  { %1390 = vpow2.f32 %v1135_v9 }
 0x141   :  { %v1379_v10 = vpop.eup %1378  ;;  %1392 = vpow2.f32 %v1137_v48 }
 0x142   :  { %v1381_v52 = vpop.eup %1380 }
 0x143   :  { %v1383_v11 = vpop.eup %1382 }
 0x144   :  { %v1385_v12 = vpop.eup %1384  ;;  %v994_v14 = vcombine.low %v1379_v10, %v1383_v11 }
 0x145   :  { %v995_v15 = vcombine.low %v1381_v52, %v1385_v12 }
 0x146   :  { %v1016_v16 = vrot.slane %v994_v14, %v1604_v36 }
 0x147   :  { %v1023_v17 = vrot.slane %v995_v15, %v1604_v36 }
 0x148   :  { %v1387_v18 = vpop.eup %1386 }
 0x149   :  { %v1389_v19 = vpop.eup %1388  ;;  %v1025_v20 = vcombine.low %v1016_v16, %v1023_v17  ;;  %v940_v21 = vadd.f32 1.0, %v1387_v18 }
 0x14a   :  { %v1391_v22 = vpop.eup %1390  ;;  %v942_v23 = vadd.f32 1.0, %v1389_v19 }
 0x14b   :  { %v1393_v27 = vpop.eup %1392  ;;  %v1039_v29 = vrot.slane %v1025_v20, %v1604_v36  ;;  %1394 = vrcp.f32 %v940_v21  ;;  %v941_v30 = vadd.f32 1.0, %v1391_v22 }
 0x14c   :  { %1396 = vrcp.f32 %v942_v23  ;;  %v943_v31 = vadd.f32 1.0, %v1393_v27 }
 0x14d   :  { %v1040_v32 = vcombine.low %v1032_v28, %v1039_v29  ;;  %1398 = vrcp.f32 %v941_v30  ;;  %v812_v33 = vpop.f32.mrb[6].mxu0  ;;  %v883_v35 = vpop.f32.mrb[6].mxu1 }
 0x14e   :  { %1400 = vrcp.f32 %v943_v31  ;;  %v813_v2 = vadd.f32 %v812_v33, %v246_v24  ;;  %v814_v34 = vpop.f32.mrb[7].mxu0  ;;  %v884_v3 = vadd.f32 %v883_v35, %v254_v26  ;;  %v1174_v4 = vpop.f32.mrb[7].mxu1 }
 0x14f   :  { %1091 = vst [vmem:[%s1642_s3] sm:$0xff] %v1040_v32  ;;  %v815_v44 = vadd.f32 %v814_v34, %v250_v25 }
 0x150   :  { %v1138_v37 = vmul.f32 -1.442695, %v813_v2  ;;  %v1140_v38 = vmul.f32 -1.442695, %v884_v3 }
 0x151   :  { %v1139_v0 = vmul.f32 -1.442695, %v815_v44 }
 0x152   :  { %1402 = vpow2.f32 %v1138_v37 }
 0x153   :  { %1404 = vpow2.f32 %v1139_v0 }
 0x154   :  { %1406 = vpow2.f32 %v1140_v38 }
 0x155   :  { %v1395_v39 = vpop.eup %1394 }
 0x156   :  { %v1397_v40 = vpop.eup %1396 }
 0x157   :  { %v1399_v41 = vpop.eup %1398 }
 0x158   :  { %v1401_v42 = vpop.eup %1400  ;;  %v1041_v46 = vcombine.low %v1395_v39, %v1399_v41 }
 0x159   :  { %v1042_v49 = vcombine.low %v1397_v40, %v1401_v42 }
 0x15a   :  { %v1050_v50 = vrot.slane %v1041_v46, %v1604_v36 }
 0x15b   :  { %v1057_v13 = vrot.slane %v1042_v49, %v1604_v36 }
 0x15c   :  { %v1403_v51 = vpop.eup %1402 }
 0x15d   :  { %v1405_v53 = vpop.eup %1404  ;;  %v1072_v54 = vcombine.low %v1050_v50, %v1057_v13  ;;  %v944_v55 = vadd.f32 1.0, %v1403_v51 }
 0x15e   :  { %v1407_v56 = vpop.eup %1406  ;;  %v945_v57 = vadd.f32 1.0, %v1405_v53 }
 0x15f   :  { %1408 = vrcp.f32 %v944_v55  ;;  %v946_v58 = vadd.f32 1.0, %v1407_v56  ;;  %v1080_v5 = vrot.slane %v1072_v54, %v1604_v36 }
 0x160   :  { %1410 = vrcp.f32 %v945_v57 }
 0x161   :  { %1412 = vrcp.f32 %v946_v58 }
 0x169   :  { %v1409_v59 = vpop.eup %1408 }
 0x16a   :  { %v1411_v60 = vpop.eup %1410 }
 0x16b   :  { %v1413_v61 = vpop.eup %1412  ;;  %v1043_v62 = vcombine.low %v1409_v59, %v1411_v60 }
 0x16c   :  { %v1071_v63 = vrot.slane %v1413_v61, %v1604_v36 }
 0x16d   :  { %v1064_v45 = vrot.slane %v1043_v62, %v1604_v36 }
 0x16f   :  { %v1073_v1 = vcombine.low %v1064_v45, %v1071_v63 }
 0x171   :  { %v1087_v6 = vrot.slane %v1073_v1, %v1604_v36 }
 0x173   :  { %v1088_v7 = vcombine.low %v1080_v5, %v1087_v6 }
 0x175   :  { %1096 = vst.msk [vmem:[%s1642_s3 + $0x8] sm:$0x7f] %vm1094_vm5, %v1088_v7 }
 0x176   :  { %1101 = vsyncpa [#allocation3], 1 }
 0x177   :  { %1102 = vsyncpa [#allocation5], 1 }

</bundles_post_ra>
